<compile_context>
chip_gen: v7x
topology: tpu7x:2x2x1
jax: 0.10.0
libtpu: 0.0.40
codegen_flags: <defaults>
</compile_context>

<pallas_src>
import jax
import jax.numpy as jnp
from jax.experimental import pallas as pl
from jax.experimental.pallas import tpu as pltpu


_MAX_TILE = 512  # 512-class f32 tiles, double-buffered, are ~7 MiB << 64 MiB (v7x VMEM)


def _round_up(x: int, m: int) -> int:
    return (x + m - 1) // m * m


def _largest_dividing_tile(total: int, unit: int, max_tile: int) -> int:
    """Largest multiple of `unit` that divides `total` and is <= max_tile."""
    best = unit
    t = unit
    while t <= max_tile:
        if total % t == 0:
            best = t
        t += unit
    return best


# ---------------------------------------------------------------------------
# Kernels
# ---------------------------------------------------------------------------

def _linear_kernel_acc(x_ref, w_ref, b_ref, o_ref, acc_ref):
    """One (tm, tn) output tile accumulated over the K grid axis (axis 2).

    x_ref  : (tm, tk)  activation tile
    w_ref  : (tk, tn)  weight tile (pre-transposed to (K, N) at prep time)
    b_ref  : (1, tn)   f32 bias tile
    o_ref  : (tm, tn)  output tile
    acc_ref: (tm, tn)  f32 VMEM accumulator (persists across the K axis)
    """
    k = pl.program_id(2)

    @pl.when(k == 0)
    def _():
        acc_ref[...] = jnp.zeros_like(acc_ref)

    # Pure MXU matmul on the stored layout -- no in-kernel transpose.
    acc_ref[...] += jnp.dot(x_ref[...], w_ref[...],
                            preferred_element_type=jnp.float32)

    @pl.when(k == pl.num_programs(2) - 1)
    def _():
        o_ref[...] = (acc_ref[...] + b_ref[...]).astype(o_ref.dtype)


def _linear_kernel_single_k(x_ref, w_ref, b_ref, o_ref):
    """Small-K fast path: whole contraction per tile, no accumulator/phases."""
    o_ref[...] = (jnp.dot(x_ref[...], w_ref[...],
                          preferred_element_type=jnp.float32)
                  + b_ref[...]).astype(o_ref.dtype)


# ---------------------------------------------------------------------------
# Parameter prep (call once, reuse) + forward
# ---------------------------------------------------------------------------

def prepare_linear_params(weight, bias, *, compute_dtype=None):
    """One-time parameter prep, hoisted out of the per-call path.

    weight : (N, K)  PyTorch layout (out_features, in_features)
    bias   : (N,)
    compute_dtype : optionally cast W (and x in apply) to e.g. jnp.bfloat16
                    for MXU throughput on v6e/v7x; accumulation stays f32.
    """
    N, K = weight.shape
    assert bias.shape == (N,)

    w_t = weight.T                                   # (K, N): MXU-friendly layout
    if compute_dtype is not None:
        w_t = w_t.astype(compute_dtype)

    # K tiling: full-dim block when small (no padding), else lane-aligned tiles.
    if K <= _MAX_TILE:
        tk, Kp = K, K
    else:
        Kp = _round_up(K, 128)
        tk = _largest_dividing_tile(Kp, 128, _MAX_TILE)

    # N tiling: same policy -- only go lane-dense/padded when actually required.
    if N <= _MAX_TILE:
        tn, Np = N, N
    else:
        Np = _round_up(N, 128)
        tn = _largest_dividing_tile(Np, 128, _MAX_TILE)

    if (Kp, Np) != (K, N):
        w_t = jnp.pad(w_t, ((0, Kp - K), (0, Np - N)))
    b2 = bias.astype(jnp.float32).reshape(1, N)
    if Np != N:
        b2 = jnp.pad(b2, ((0, 0), (0, Np - N)))

    return dict(w_t=w_t, b=b2, N=N, K=K, Np=Np, Kp=Kp, tn=tn, tk=tk,
                compute_dtype=compute_dtype)


def linear_encoder_apply(x, params):
    """nn.Linear forward: out = x @ W.T + b, with params from prepare_linear_params."""
    B, K = x.shape
    assert K == params["K"]
    out_dtype = x.dtype

    compute_dtype = params["compute_dtype"]
    if compute_dtype is not None:
        x = x.astype(compute_dtype)

    w_t, b2 = params["w_t"], params["b"]
    N, Np, Kp = params["N"], params["Np"], params["Kp"]
    tn, tk = params["tn"], params["tk"]

    # Batch tiling: full-dim block for small B (no pad at all; any B is legal
    # as a full-dim block), 512-class tiles otherwise.
    if B <= _MAX_TILE:
        tm, Mp = B, B
    else:
        tm = _MAX_TILE
        Mp = _round_up(B, tm)

    # v7x megacore: if the batch axis has only one block, split the N axis into
    # >=2 lane-dense blocks so both TensorCores get work.
    if Mp // tm == 1 and Np // tn == 1 and Np >= 256 and Np % 128 == 0:
        tn = _largest_dividing_tile(Np, 128, Np // 2)

    # Pad x only when actually needed (aligned / small case skips the HBM trip).
    if (Mp, Kp) != (B, K):
        x = jnp.pad(x, ((0, Mp - B), (0, Kp - K)))

    mt, nt, kt = Mp // tm, Np // tn, Kp // tk

    out_itemsize = jnp.dtype(out_dtype).itemsize
    cost = pl.CostEstimate(
        flops=2 * Mp * Np * Kp,
        transcendentals=0,
        bytes_accessed=(nt * Mp * Kp * x.dtype.itemsize       # x re-streamed per j block
                        + mt * Kp * Np * w_t.dtype.itemsize    # W re-streamed per i block
                        + Np * 4
                        + Mp * Np * out_itemsize),
    )

    # Scoped VMEM budget: double-buffered tiles + accumulator, 2x headroom,
    # clamped to v7x's 64 MiB physical VMEM (v5e/v6e have 128 MiB).
    footprint = (2 * tm * tk * x.dtype.itemsize
                 + 2 * tk * tn * w_t.dtype.itemsize
                 + 2 * tn * 4
                 + 2 * tm * tn * out_itemsize
                 + tm * tn * 4)
    vmem_limit = int(min(64 << 20, max(32 << 20, 2 * footprint)))

    if kt == 1:
        out_p = pl.pallas_call(
            _linear_kernel_single_k,
            out_shape=jax.ShapeDtypeStruct((Mp, Np), out_dtype),
            grid_spec=pltpu.PrefetchScalarGridSpec(
                num_scalar_prefetch=0,
                grid=(mt, nt),
                in_specs=[
                    pl.BlockSpec((tm, Kp), lambda i, j: (i, 0)),   # x
                    pl.BlockSpec((Kp, tn), lambda i, j: (0, j)),   # W^T
                    pl.BlockSpec((1, tn), lambda i, j: (0, j)),    # bias
                ],
                out_specs=pl.BlockSpec((tm, tn), lambda i, j: (i, j)),
            ),
            compiler_params=pltpu.CompilerParams(
                dimension_semantics=("parallel", "parallel"),
                vmem_limit_bytes=vmem_limit,
            ),
            cost_estimate=cost,
        )(x, w_t, b2)
    else:
        out_p = pl.pallas_call(
            _linear_kernel_acc,
            out_shape=jax.ShapeDtypeStruct((Mp, Np), out_dtype),
            grid_spec=pltpu.PrefetchScalarGridSpec(
                num_scalar_prefetch=0,
                grid=(mt, nt, kt),                       # reduction axis last
                in_specs=[
                    pl.BlockSpec((tm, tk), lambda i, j, k: (i, k)),   # x
                    pl.BlockSpec((tk, tn), lambda i, j, k: (k, j)),   # W^T
                    pl.BlockSpec((1, tn), lambda i, j, k: (0, j)),    # bias
                ],
                out_specs=pl.BlockSpec((tm, tn), lambda i, j, k: (i, j)),
                scratch_shapes=[pltpu.VMEM((tm, tn), jnp.float32)],
            ),
            compiler_params=pltpu.CompilerParams(
                dimension_semantics=("parallel", "parallel", "arbitrary"),
                vmem_limit_bytes=vmem_limit,
            ),
            cost_estimate=cost,
        )(x, w_t, b2)

    if (Mp, Np) != (B, N):
        out_p = out_p[:B, :N]
    return out_p


def linear_encoder_forward(x, weight, bias, *, compute_dtype=None):
    """Convenience one-shot API. Prefer prepare_linear_params() once + apply."""
    return linear_encoder_apply(
        x, prepare_linear_params(weight, bias, compute_dtype=compute_dtype))


if __name__ == "__main__":
    key = jax.random.PRNGKey(0)
    kx, kw, kb, kx2, kw2, kb2 = jax.random.split(key, 6)

    # ----- Test 1: demo-sized LinearEncoder (8x16 -> 8x32), strict tolerance --
    input_size = 32      # out_features
    output_size = 16     # in_features (latent_dims)
    batch = 8

    bound = 1.0 / jnp.sqrt(jnp.float32(output_size))
    weight = jax.random.uniform(kw, (input_size, output_size), jnp.float32,
                                minval=-bound, maxval=bound)
    bias = jax.random.uniform(kb, (input_size,), jnp.float32,
                              minval=-bound, maxval=bound)
    x = jax.random.normal(kx, (batch, output_size), jnp.float32)

    params = prepare_linear_params(weight, bias)      # hoisted, one-time prep
    out = jax.block_until_ready(linear_encoder_apply(x, params))

    ref = x @ weight.T + bias
    assert out.shape == (batch, input_size)
    assert jnp.allclose(out, ref, atol=1e-5, rtol=1e-5)

    # ----- Test 2: multi-tile path (K-reduction grid + accumulator + N split) --
    # Loose tolerance: TPU f32 MXU passes are not bit-exact vs. XLA's dot.
    B2, K2, N2 = 128, 1024, 384
    x2 = jax.random.normal(kx2, (B2, K2), jnp.float32)
    w2 = jax.random.uniform(kw2, (N2, K2), jnp.float32, minval=-0.05, maxval=0.05)
    b2 = jax.random.uniform(kb2, (N2,), jnp.float32, minval=-0.05, maxval=0.05)

    params2 = prepare_linear_params(w2, b2)
    out2 = jax.block_until_ready(linear_encoder_apply(x2, params2))

    ref2 = x2 @ w2.T + b2
    assert out2.shape == (B2, N2)
    assert jnp.allclose(out2, ref2, atol=3e-2, rtol=3e-2)

    print("KERNEL_OK")
</pallas_src>

<mosaic_0001>
module attributes {stable_mosaic.version = 11 : i64} {
  func.func @_linear_kernel_single_k(%arg0: i32, %arg1: i32, %arg2: memref<8x16xf32, #tpu.memory_space<vmem>>, %arg3: memref<16x32xf32, #tpu.memory_space<vmem>>, %arg4: memref<1x32xf32, #tpu.memory_space<vmem>>, %arg5: memref<8x32xf32, #tpu.memory_space<vmem>>) attributes {dimension_semantics = [#tpu.dimension_semantics<parallel>, #tpu.dimension_semantics<parallel>], iteration_bounds = array<i64: 1, 1>, scalar_prefetch = 0 : i64, scratch_operands = 0 : i64, tpu.core_type = #tpu.core_type<tc>, window_params = [{transform_indices = @transform_0, window_bounds = array<i64: 8, 16>}, {transform_indices = @transform_1, window_bounds = array<i64: 16, 32>}, {transform_indices = @transform_2, window_bounds = array<i64: 1, 32>}, {transform_indices = @transform_3, window_bounds = array<i64: 8, 32>}]} {
    %c0 = arith.constant 0 : index
    %c0_0 = arith.constant 0 : index
    %0 = vector.load %arg2[%c0, %c0_0] : memref<8x16xf32, #tpu.memory_space<vmem>>, vector<8x16xf32>
    %c0_1 = arith.constant 0 : index
    %c0_2 = arith.constant 0 : index
    %1 = vector.load %arg3[%c0_1, %c0_2] : memref<16x32xf32, #tpu.memory_space<vmem>>, vector<16x32xf32>
    %cst = arith.constant dense<0.000000e+00> : vector<8x32xf32>
    %2 = tpu.matmul %0, %1, %cst {dimension_numbers = #tpu.dot_dimension_numbers<[1], [0], [0], [1], [0, 0, 1, 1], [], []>} : vector<8x16xf32>, vector<16x32xf32>, vector<8x32xf32> -> vector<8x32xf32>
    %c0_3 = arith.constant 0 : index
    %c0_4 = arith.constant 0 : index
    %3 = vector.load %arg4[%c0_3, %c0_4] : memref<1x32xf32, #tpu.memory_space<vmem>>, vector<1x32xf32>
    %4 = vector.broadcast %3 : vector<1x32xf32> to vector<8x32xf32>
    %5 = arith.addf %2, %4 : vector<8x32xf32>
    %c0_5 = arith.constant 0 : index
    %c0_6 = arith.constant 0 : index
    %6 = vector.load %arg5[%c0_5, %c0_6] : memref<8x32xf32, #tpu.memory_space<vmem>>, vector<8x32xf32>
    tpu.vector_store %arg5[%c0_5, %c0_6], %5 {strides = array<i32>} : memref<8x32xf32, #tpu.memory_space<vmem>>, vector<8x32xf32>,
    return
  }
  func.func @transform_0(%arg0: i32, %arg1: i32) -> (i32, i32) {
    %c0_i32 = arith.constant 0 : i32
    %c0_i32_0 = arith.constant 0 : i32
    return %arg0, %c0_i32 : i32, i32
  }
  func.func @transform_1(%arg0: i32, %arg1: i32) -> (i32, i32) {
    %c0_i32 = arith.constant 0 : i32
    %c0_i32_0 = arith.constant 0 : i32
    return %c0_i32, %arg1 : i32, i32
  }
  func.func @transform_2(%arg0: i32, %arg1: i32) -> (i32, i32) {
    %c0_i32 = arith.constant 0 : i32
    %c0_i32_0 = arith.constant 0 : i32
    return %c0_i32, %arg1 : i32, i32
  }
  func.func @transform_3(%arg0: i32, %arg1: i32) -> (i32, i32) {
    %c0_i32 = arith.constant 0 : i32
    return %arg0, %arg1 : i32, i32
  }
}

</mosaic_0001>

<bundles_post_ra>
// kernel: tpu_custom_call.1
= control target key start
LH: loop header
LB: loop body
LE: loop exit
PB: predicated region body
PF: predicated region fallthrough
CT: control target
= control target key end

     0   :  { %8 = vsyncpa [#allocation3], 0  ;;  %s312_s0 = inlined_call_operand.hbm [shape: f32[8,16], index: 0, kind: input, shape index: {}]   ;;  %s313_s1 = inlined_call_operand.hbm [shape: f32[16,32], index: 1, kind: input, shape index: {}]   ;;  %s314_s2 = inlined_call_operand.vmem [shape: f32[1,32], index: 2, kind: input, shape index: {}]   ;;  %s315_s3 = inlined_call_operand.hbm [shape: f32[8,32], index: 3, kind: output, shape index: {}]  }
   0x1   :  { %9 = vsyncpa [#allocation6], 0 }
   0x2   :  { %10 = vsyncpa [#allocation4], 0  ;;  %s238_s12 = smov [#allocation2]   ;;  %s239_s14 = smov [#allocation5]  }
   0x3   :  { %s17_s13 = sshll.u32 %s238_s12, 4  ;;  %s26_s15 = sshll.u32 %s239_s14, 4  ;;  %s18_s13 = int_to_ptr.vmem [resolvable:$true] %s17_s13  ;;  %s266_s15 = int_to_ptr.vmem [resolvable:$true] %s26_s15 }
   0x4   :  { %s166_s18 = scalar_lea.hbm %s312_s0, 128 }
   0x5   :  { %p167_p0 = scmp.ne.s32.totalorder %s312_s0, %s166_s18  ;;  %p170_p1 = scmp.lt.u32.totalorder %s166_s18, %s312_s0 }
   0x7   :  { %p172_p2 = pnand %p170_p1, %p167_p0 }
   0x9   :  { %175 = shalt.err (!%p172_p2)
}
   0xa   :  { %s176_s23 = scalar_lea.vmem %s18_s13, 128  ;;  %p181_p4 = scmp.lt.s32.totalorder %s18_s13, %s18_s13 }
   0xb   :  { %p177_p3 = scmp.ne.s32.totalorder %s18_s13, %s176_s23  ;;  %p182_p5 = scmp.lt.s32.totalorder %s176_s23, %s176_s23 }
   0xd   :  { %p183_p6 = por %p182_p5, %p181_p4 }
   0xf   :  { %p184_p7 = pnand %p183_p6, %p177_p3 }
  0x11   :  { %187 = shalt.err (!%p184_p7)
}
  0x12   :  { %20 = dma.hbm_to_vmem [thread:$0]  %s312_s0, 128, %s18_s13, [#allocation3]  }
  0x13   :  { %s188_s28 = scalar_lea.hbm %s313_s1, 256 }
  0x14   :  { %p189_p8 = scmp.ne.s32.totalorder %s313_s1, %s188_s28  ;;  %p192_p9 = scmp.lt.u32.totalorder %s188_s28, %s313_s1 }
  0x16   :  { %p194_p10 = pnand %p192_p9, %p189_p8 }
  0x18   :  { %197 = shalt.err (!%p194_p10)
}
  0x19   :  { %s198_s6 = scalar_lea.vmem %s266_s15, 256  ;;  %p203_p12 = scmp.lt.s32.totalorder %s266_s15, %s266_s15 }
  0x1a   :  { %p199_p11 = scmp.ne.s32.totalorder %s266_s15, %s198_s6  ;;  %p204_p13 = scmp.lt.s32.totalorder %s198_s6, %s198_s6 }
  0x1c   :  { %p205_p0 = por %p204_p13, %p203_p12 }
  0x1e   :  { %p206_p1 = pnand %p205_p0, %p199_p11 }
  0x20   :  { %209 = shalt.err (!%p206_p1)
}
  0x21   :  { %s240_s0 = smov 128   ;;  %s241_s7 = smov 8  }
  0x22   :  { %32 = dma.hbm_to_vmem [thread:$0]  %s313_s1, 256, %s266_s15, [#allocation6], %s240_s0, %s240_s0, %s241_s7  }
  0x23   :  { %232 = dma.done.wait [#allocation3], 128  }
  0x24   :  { %233 = vsyncadd [#allocation3], 4294967168 }
  0x25   :  { %234 = dma.done.wait [#allocation6], 256  }
  0x26   :  { %235 = vsyncadd [#allocation6], 4294967040  ;;  %v242_v0 = vmov 0.0|0.0   ;;  %vm243_vm0 = vmmov 0   ;;  %v244_v1 = vmov 0.0   ;;  %v42_v2 = vld [vmem:[#allocation5] sm:$0xff] }
  0x27   :  { %155 = vmatprep.subr.bf16.mxu0 %v242_v0  ;;  %152 = vmatprep.mubr.msk.f32.mxu0 %vm243_vm0, %v244_v1  ;;  %v43_v3 = vld [vmem:[#allocation5 + $0x8] sm:$0xff]  ;;  %v41_v5 = vld [vmem:[#allocation2] sm:$0xff]  ;;  %vm51_vm1 = vcmask 130048   ;;  %s245_s1 = smov [#allocation7]   ;;  %vm125_vm2 = vcmask 261120  }
  0x28   :  { %v156_v4 = vpack.c.bf16 %v43_v3, %v42_v2  ;;  %v143_v6 = vld [vmem:[%s314_s2] ss:$0 sm:$0xff]  ;;  %s133_s12 = sshll.u32 %s245_s1, 4  ;;  %s134_s12 = int_to_ptr.vmem [resolvable:$true] %s133_s12 }
  0x29   :  { %s210_s13 = scalar_lea.vmem %s134_s12, 128  ;;  %p215_p3 = scmp.lt.s32.totalorder %s134_s12, %s134_s12 }
  0x2a   :  { %157 = vmatpush3.bf16.msra.mxu0 %v156_v4  ;;  %p211_p2 = scmp.ne.s32.totalorder %s134_s12, %s210_s13  ;;  %p216_p4 = scmp.lt.s32.totalorder %s210_s13, %s210_s13 }
  0x2c   :  { %p217_p5 = por %p216_p4, %p215_p3 }
  0x2d   :  { %153 = vmatmul.mubr.msk.f32.vlgmr.msra.gmra.mrb[0].mxu0 %vm51_vm1, %v41_v5 }
  0x2e   :  { %p218_p6 = pnand %p217_p5, %p211_p2 }
 0x100   :  { %v121_v7 = vpop.f32.mrb[0].mxu0 }
 0x101   :  { %v122_v8 = vadd.f32 %v143_v6, %v121_v7  ;;  %v154_v9 = vpop.f32.mrb[1].mxu0 }
 0x103   :  { %126 = vst.msk [vmem:[#allocation7] sm:$0xff] %vm125_vm2, %v122_v8 }
 0x104   :  { %221 = shalt.err (!%p218_p6)
}
 0x105   :  { %s222_s16 = scalar_lea.hbm %s315_s3, 128 }
 0x106   :  { %p223_p7 = scmp.ne.s32.totalorder %s315_s3, %s222_s16  ;;  %p226_p8 = scmp.lt.u32.totalorder %s222_s16, %s315_s3 }
 0x108   :  { %p228_p9 = pnand %p226_p8, %p223_p7 }
 0x10a   :  { %231 = shalt.err (!%p228_p9)
}
 0x10b   :  { %136 = dma.vmem_to_hbm [thread:$0]  %s134_s12, 128, %s315_s3, [#allocation4]  }
 0x10c   :  { %236 = dma.done.wait [#allocation4], 128  }
 0x10d   :  { %237 = vsyncadd [#allocation4], 4294967168 }
 0x10e   :  { %140 = vsyncpa [#allocation3], 1 }
 0x10f   :  { %141 = vsyncpa [#allocation6], 1 }
 0x110   :  { %142 = vsyncpa [#allocation4], 1 }

</bundles_post_ra>
